<compile_context>
chip_gen: v7x
topology: tpu7x:2x2x1
jax: 0.10.0
libtpu: 0.0.40
codegen_flags: <defaults>
</compile_context>

<pallas_src>
import functools

import jax
import jax.numpy as jnp
from jax import lax
from jax.experimental import pallas as pl
from jax.experimental.pallas import tpu as pltpu


def _vmem_capacity_bytes():
    """Best-effort physical VMEM capacity per TensorCore (bytes)."""
    try:
        return int(pltpu.get_tpu_info().vmem_capacity_bytes)
    except Exception:
        pass
    try:
        kind = jax.devices()[0].device_kind.lower()
        if "v5" in kind or "v6" in kind:
            return 128 * 1024 * 1024
        if "v7" in kind:
            return 64 * 1024 * 1024
    except Exception:
        pass
    return 64 * 1024 * 1024  # conservative (v7x-sized) fallback


def _decoder_kernel_resident(zl_ref, zr_ref, o_ref, *, tn, act_dtype):
    """One (tm, tn) tile of sigmoid(z @ z.T); full z resident in VMEM as the RHS."""
    j = pl.program_id(1)
    start = pl.multiple_of(j * tn, tn)
    zr = zr_ref[pl.ds(start, tn), :]                       # (tn, D) rows j-block of z
    acc = lax.dot_general(
        zl_ref[...], zr,
        dimension_numbers=(((1,), (1,)), ((), ())),         # contract last dims -> (tm, tn)
        preferred_element_type=jnp.float32,
    )
    o_ref[...] = jax.nn.sigmoid(acc.astype(act_dtype)).astype(o_ref.dtype)


def _decoder_kernel_blocked(zl_ref, zr_ref, o_ref, *, act_dtype):
    """One (tm, tn) tile of sigmoid(z @ z.T); RHS streamed per j-block."""
    acc = lax.dot_general(
        zl_ref[...], zr_ref[...],
        dimension_numbers=(((1,), (1,)), ((), ())),         # contract last dims -> (tm, tn)
        preferred_element_type=jnp.float32,
    )
    o_ref[...] = jax.nn.sigmoid(acc.astype(act_dtype)).astype(o_ref.dtype)


@functools.partial(jax.jit, static_argnames=("tm", "tn", "out_dtype"))
def inner_product_decoder(z, *, tm=512, tn=2048, out_dtype=None):
    """adj = sigmoid(z @ z.T); z: (N, D).

    out_dtype=jnp.bfloat16 is strongly recommended for large N (halves the
    dominant N*N writeback traffic, ~0.4% relative error on the probabilities).
    """
    N, D = z.shape
    out_dtype = jnp.dtype(z.dtype) if out_dtype is None else jnp.dtype(out_dtype)

    itemsize = jnp.dtype(z.dtype).itemsize
    out_itemsize = out_dtype.itemsize

    # Generation-aware sizing: v7x has 64 MiB VMEM per TensorCore (and 2 TCs),
    # v5e/v6e have 128 MiB per (single) TensorCore.
    vmem_cap = _vmem_capacity_bytes()
    small_vmem = vmem_cap <= (64 << 20)                    # v7x-class
    vmem_limit_cap = (48 << 20) if small_vmem else (96 << 20)
    resident_threshold = (8 << 20) if small_vmem else (16 << 20)

    # Clamp tiles to the problem size (small demos collapse to fewer blocks).
    tm = min(tm, N)
    tn = min(tn, N)
    assert N % tm == 0 and N % tn == 0, "pick tile sizes dividing N (or pad z)"

    # Megacore guard: if the grid collapsed to a single block, split the row
    # axis so both TensorCores (v7x) get work. Neutral on single-core chips.
    if (N // tm) * (N // tn) < 2 and N % 16 == 0:
        tm = N // 2

    grid = (N // tm, N // tn)

    # bf16 sigmoid only where the chip has a bf16 EUP (v7x-class) and the
    # caller asked for a bf16 output; v5e/v6e keep the activation in f32.
    act_dtype = (
        jnp.bfloat16
        if (small_vmem and out_dtype == jnp.dtype(jnp.bfloat16))
        else jnp.float32
    )

    # Keep the whole z resident in VMEM as the RHS when it fits the per-gen
    # budget (single DMA, constant index_map, single-buffered); otherwise
    # stream (tn, D) row blocks.
    rhs_resident = (N * D * itemsize) <= resident_threshold

    if rhs_resident:
        kernel = functools.partial(_decoder_kernel_resident, tn=tn, act_dtype=act_dtype)
        rhs_spec = pl.BlockSpec(
            (N, D), lambda i, j: (0, 0), pipeline_mode=pl.Buffered(1)
        )
        rhs_bytes = N * D * itemsize                       # single-buffered
    else:
        kernel = functools.partial(_decoder_kernel_blocked, act_dtype=act_dtype)
        rhs_spec = pl.BlockSpec((tn, D), lambda i, j: (j, 0))
        rhs_bytes = 2 * tn * D * itemsize                  # double-buffered

    # Explicit scoped-VMEM budget (buffers + headroom), capped per generation.
    buf_bytes = 2 * tm * D * itemsize + rhs_bytes + 2 * tm * tn * out_itemsize
    vmem_limit = int(min(vmem_limit_cap, max(16 << 20, 2 * buf_bytes)))

    return pl.pallas_call(
        kernel,
        out_shape=jax.ShapeDtypeStruct((N, N), out_dtype),
        grid_spec=pltpu.PrefetchScalarGridSpec(
            num_scalar_prefetch=0,
            grid=grid,
            in_specs=[
                # left operand: row-block i of z, full contraction dim
                pl.BlockSpec((tm, D), lambda i, j: (i, 0)),
                # right operand: resident full z, or row-block j of z
                rhs_spec,
            ],
            out_specs=pl.BlockSpec((tm, tn), lambda i, j: (i, j)),
        ),
        compiler_params=pltpu.CompilerParams(
            dimension_semantics=("parallel", "parallel"),
            vmem_limit_bytes=vmem_limit,
        ),
    )(z, z)


if __name__ == "__main__":
    key = jax.random.PRNGKey(0)
    N, D = 256, 64  # small node-embedding matrix z: (num_nodes, hidden)
    z = jax.random.normal(key, (N, D), dtype=jnp.float32)

    adj = inner_product_decoder(z)
    adj = jax.block_until_ready(adj)

    # correctness check vs. plain JAX reference
    ref = jax.nn.sigmoid(z @ z.T)
    assert adj.shape == (N, N)
    assert jnp.allclose(adj, ref, atol=1e-5, rtol=1e-5), "mismatch vs reference"

    print("KERNEL_OK")
</pallas_src>

<mosaic_0001>
module attributes {stable_mosaic.version = 11 : i64} {
  func.func @_decoder_kernel_resident(%arg0: i32, %arg1: i32, %arg2: memref<128x64xf32, #tpu.memory_space<vmem>>, %arg3: memref<256x64xf32, #tpu.memory_space<vmem>>, %arg4: memref<128x256xf32, #tpu.memory_space<vmem>>) attributes {dimension_semantics = [#tpu.dimension_semantics<parallel>, #tpu.dimension_semantics<parallel>], iteration_bounds = array<i64: 2, 1>, scalar_prefetch = 0 : i64, scratch_operands = 0 : i64, tpu.core_type = #tpu.core_type<tc>, window_params = [{transform_indices = @transform_0, window_bounds = array<i64: 128, 64>}, {pipeline_mode = #tpu.pipeline_mode<synchronous>, transform_indices = @transform_1, window_bounds = array<i64: 256, 64>}, {transform_indices = @transform_2, window_bounds = array<i64: 128, 256>}]} {
    %c256_i32 = arith.constant 256 : i32
    %0 = arith.muli %arg1, %c256_i32 : i32
    %1 = tpu.assume_multiple %0, 256 : i32
    %2 = arith.index_cast %1 : i32 to index
    %c0 = arith.constant 0 : index
    %3 = vector.load %arg3[%2, %c0] : memref<256x64xf32, #tpu.memory_space<vmem>>, vector<256x64xf32>
    %c0_0 = arith.constant 0 : index
    %c0_1 = arith.constant 0 : index
    %4 = vector.load %arg2[%c0_0, %c0_1] : memref<128x64xf32, #tpu.memory_space<vmem>>, vector<128x64xf32>
    %cst = arith.constant dense<0.000000e+00> : vector<128x256xf32>
    %5 = tpu.matmul %4, %3, %cst {dimension_numbers = #tpu.dot_dimension_numbers<[1], [1], [0], [0], [0, 0, 1, 0], [], []>} : vector<128x64xf32>, vector<256x64xf32>, vector<128x256xf32> -> vector<128x256xf32>
    %6 = arith.negf %5 : vector<128x256xf32>
    %7 = math.exp %6 : vector<128x256xf32>
    %cst_2 = arith.constant 1.000000e+00 : f32
    %8 = vector.broadcast %cst_2 : f32 to vector<128x256xf32>
    %9 = arith.addf %8, %7 : vector<128x256xf32>
    %10 = arith.divf %8, %9 : vector<128x256xf32>
    %c0_3 = arith.constant 0 : index
    %c0_4 = arith.constant 0 : index
    %11 = vector.load %arg4[%c0_3, %c0_4] : memref<128x256xf32, #tpu.memory_space<vmem>>, vector<128x256xf32>
    tpu.vector_store %arg4[%c0_3, %c0_4], %10 {strides = array<i32>} : memref<128x256xf32, #tpu.memory_space<vmem>>, vector<128x256xf32>,
    return
  }
  func.func @transform_0(%arg0: i32, %arg1: i32) -> (i32, i32) {
    %c0_i32 = arith.constant 0 : i32
    %c0_i32_0 = arith.constant 0 : i32
    return %arg0, %c0_i32 : i32, i32
  }
  func.func @transform_1(%arg0: i32, %arg1: i32) -> (i32, i32) {
    %c0_i32 = arith.constant 0 : i32
    %c0_i32_0 = arith.constant 0 : i32
    %c0_i32_1 = arith.constant 0 : i32
    return %c0_i32, %c0_i32_0 : i32, i32
  }
  func.func @transform_2(%arg0: i32, %arg1: i32) -> (i32, i32) {
    %c0_i32 = arith.constant 0 : i32
    return %arg0, %arg1 : i32, i32
  }
}

</mosaic_0001>

<bundles_post_ra>
// kernel: inner_product_decoder.1
= control target key start
LH: loop header
LB: loop body
LE: loop exit
PB: predicated region body
PF: predicated region fallthrough
CT: control target
= control target key end

     0   :  { %7 = vsyncpa [#allocation3], 0  ;;  %s1734_s0 = inlined_call_operand.vmem [shape: f32[256,64], index: 0, kind: input, shape index: {}, may-alias: {0,1}]   ;;  %s1735_s1 = inlined_call_operand.vmem [shape: f32[256,64], index: 1, kind: input, shape index: {}, may-alias: {0,1}]   ;;  %s1736_s2 = inlined_call_operand.hbm [shape: f32[256,256], index: 2, kind: output, shape index: {}]  }
   0x1   :  { %9 = vsyncpa [#allocation3 + $0x1], 0  ;;  %s1339_s9 = smov 0   ;;  %s1341_s10 = smov 0  }
   0x2   :  { %s1343_s11 = smov 0   ;;  %s1345_s12 = smov 0  }
   0x3   :  { %s1347_s13 = smov 0   ;;  %s1349_s14 = smov 0  }
   0x4 LB: > { %s832_s15 = sadd.s32 4294967295, %s1319_s14   ;;  %s833_s16 = sadd.s32 4294967294, %s1319_s14   ;;  %s1319_s14 = sphi %s1349_s14, %s15_s14   ;;  %s1315_s13 = sphi %s1347_s13, %s1745_s13   ;;  %s1311_s12 = sphi %s1345_s12, %s1744_s12   ;;  %s1307_s11 = sphi %s1343_s11, %s1743_s11   ;;  %s1303_s10 = sphi %s1341_s10, %s1742_s10   ;;  %s1299_s9 = sphi %s1339_s9, %s1741_s9  }
   0x5   : > { %s27_s17 = sadd.s32 1, %s1315_s13  ;;  %s83_s18 = sadd.s32 1, %s1307_s11 }
   0x6   : > { %p29_p0 = scmp.ge.s32.totalorder %s27_s17, 2  ;;  %p93_p1 = scmp.ne.s32.totalorder %s1307_s11, %s1303_s10 }
   0x7   : > { %p94_p2 = scmp.eq.s32.totalorder %s832_s15, 1  ;;  %p99_p3 = scmp.ne.s32.totalorder %s1303_s10, %s1299_s9 }
   0x8   : > { %s1747_s17 = smov (%p29_p0, %s27_s17), 0  ;;  %p100_p5 = scmp.eq.s32.totalorder %s833_s16, 1 }
   0x9   : > { %p1379_p4 = por %p94_p2, %p93_p1  ;;  %s78_s20 = ssub.s32 %s1315_s13, %s1747_s17 }
   0xa   : > { %p836_p6 = scmp.ge.s32.totalorder %s1319_s14, 1  ;;  %p81_p7 = scmp.eq.s32.totalorder %s78_s20, 0 }
   0xb   : > { %p1386_p8 = por %p100_p5, %p99_p3  ;;  %p130_p9 = scmp.lt.s32.totalorder %s1319_s14, 3 }
   0xc   : > { %s1392_s22 = scalar_select %p81_p7, %s1307_s11, %s83_s18  }
   0xd   : > { %p131_p10 = pnand %p836_p6, %p130_p9 }
   0xe   : > { %v178_v0 = vld [vmem:[%s1735_s1 + $0x80] sm:$0xff] (!%p131_p10)  ;;  %v179_v1 = vld [vmem:[%s1735_s1 + $0x88] sm:$0xff] (!%p131_p10)  ;;  %vm210_vm0 = vcmask (!%p131_p10), 523264   ;;  %s838_s29 = sshll.u32 (!%p131_p10), %s1311_s12, 4  ;;  %v180_v6 = vld [vmem:[%s1735_s1 + $0x90] sm:$0xff] (!%p131_p10)  ;;  %s927_s24 = sshll.u32 (!%p131_p10), %s1311_s12, 12 }
   0xf   : > { %134 = sbr.rel (%p131_p10) target bundleno = 392 (0x188), region = 28  ;;  %v162_v2 = vld [vmem:[%s1735_s1] sm:$0xff] (!%p131_p10)  ;;  %v992_v3 = vpack.c.bf16 (!%p131_p10), %v179_v1, %v178_v0  ;;  %vm1406_vm1 = vmpackc.low (!%p131_p10), %vm210_vm0, %vm210_vm0  ;;  %v163_v5 = vld [vmem:[%s1735_s1 + $0x8] sm:$0xff] (!%p131_p10)  ;;  %p153_p11 = scmp.lt.s32.totalorder (!%p131_p10), %s838_s29, 31 }
  0x10   : > { %v995_v7 = vpack.c.bf16 (!%p131_p10), %v163_v5, %v162_v2  ;;  %v181_v8 = vld [vmem:[%s1735_s1 + $0x98] sm:$0xff] (!%p131_p10)  ;;  %v164_v10 = vld [vmem:[%s1735_s1 + $0x10] sm:$0xff] (!%p131_p10)  ;;  %v182_v12 = vld [vmem:[%s1735_s1 + $0xa0] sm:$0xff] (!%p131_p10)  ;;  %s1679_s28 = scalar_lea.hbm (!%p131_p10), %s1736_s2, %s927_s24  ;;  %s1321_s3 = smov (!%p131_p10), [#allocation2]  }
  0x11   : > { %994 = vmatprep.subr.msk.bf16.mxu0 (!%p131_p10), %vm1406_vm1, %v992_v3  ;;  %1040 = vmatprep.subr.msk.bf16.mxu1 (!%p131_p10), %vm1406_vm1, %v992_v3  ;;  %v998_v9 = vpack.c.bf16 (!%p131_p10), %v181_v8, %v180_v6  ;;  %v165_v11 = vld [vmem:[%s1735_s1 + $0x18] sm:$0xff] (!%p131_p10)  ;;  %v183_v13 = vld [vmem:[%s1735_s1 + $0xa8] sm:$0xff] (!%p131_p10)  ;;  %v166_v18 = vld [vmem:[%s1735_s1 + $0x20] sm:$0xff] (!%p131_p10)  ;;  %s1245_s4 = sshll.u32 (!%p131_p10), %s1321_s3, 4  ;;  %s1246_s4 = int_to_ptr.vmem [resolvable:$false] %s1245_s4 }
  0x12   : > { %997 = vmatpush3.bf16.xpose.msk.msra.mxu0 (!%p131_p10), %vm1406_vm1, %v995_v7  ;;  %1048 = vmatpush3.bf16.xpose.msk.msra.mxu1 (!%p131_p10), %vm1406_vm1, %v995_v7  ;;  %v1001_v14 = vpack.c.bf16 (!%p131_p10), %v165_v11, %v164_v10  ;;  %v1004_v15 = vpack.c.bf16 (!%p131_p10), %v183_v13, %v182_v12  ;;  %v167_v19 = vld [vmem:[%s1735_s1 + $0x28] sm:$0xff] (!%p131_p10)  ;;  %v184_v20 = vld [vmem:[%s1735_s1 + $0xb0] sm:$0xff] (!%p131_p10)  ;;  %v185_v21 = vld [vmem:[%s1735_s1 + $0xb8] sm:$0xff] (!%p131_p10)  ;;  %s1247_s5 = scalar_lea.vmem (!%p131_p10), %s1246_s4, 8192 }
  0x13   : > { %1000 = vmatprep.subr.msk.bf16.mxu0 (!%p131_p10), %vm1406_vm1, %v998_v9  ;;  %1041 = vmatprep.subr.msk.bf16.mxu1 (!%p131_p10), %vm1406_vm1, %v998_v9  ;;  %v1007_v22 = vpack.c.bf16 (!%p131_p10), %v167_v19, %v166_v18  ;;  %v1010_v23 = vpack.c.bf16 (!%p131_p10), %v185_v21, %v184_v20  ;;  %v168_v24 = vld [vmem:[%s1735_s1 + $0x30] sm:$0xff] (!%p131_p10)  ;;  %v169_v25 = vld [vmem:[%s1735_s1 + $0x38] sm:$0xff] (!%p131_p10)  ;;  %v186_v26 = vld [vmem:[%s1735_s1 + $0xc0] sm:$0xff] (!%p131_p10) }
  0x14   : > { %v187_v27 = vld [vmem:[%s1735_s1 + $0xc8] sm:$0xff] (!%p131_p10)  ;;  %v1013_v28 = vpack.c.bf16 (!%p131_p10), %v169_v25, %v168_v24  ;;  %v170_v30 = vld [vmem:[%s1735_s1 + $0x40] sm:$0xff] (!%p131_p10)  ;;  %v188_v32 = vld [vmem:[%s1735_s1 + $0xd0] sm:$0xff] (!%p131_p10) }
  0x15   : > { %v1016_v29 = vpack.c.bf16 (!%p131_p10), %v187_v27, %v186_v26  ;;  %v171_v31 = vld [vmem:[%s1735_s1 + $0x48] sm:$0xff] (!%p131_p10)  ;;  %v189_v33 = vld [vmem:[%s1735_s1 + $0xd8] sm:$0xff] (!%p131_p10)  ;;  %v172_v36 = vld [vmem:[%s1735_s1 + $0x50] sm:$0xff] (!%p131_p10) }
  0x16   : > { %s1749_s29 = smov (!%p153_p11, %s838_s29), 31  ;;  %v1019_v34 = vpack.c.bf16 %v171_v31, %v170_v30  ;;  %v1022_v35 = vpack.c.bf16 %v189_v33, %v188_v32  ;;  %v173_v37 = vld [vmem:[%s1735_s1 + $0x58] sm:$0xff]  ;;  %v190_v38 = vld [vmem:[%s1735_s1 + $0xe0] sm:$0xff]  ;;  %v191_v39 = vld [vmem:[%s1735_s1 + $0xe8] sm:$0xff] }
  0x17   : > { %s839_s20 = sshll.u32 %s1749_s29, 3  ;;  %v1025_v40 = vpack.c.bf16 %v173_v37, %v172_v36  ;;  %v1028_v41 = vpack.c.bf16 %v191_v39, %v190_v38  ;;  %v174_v42 = vld [vmem:[%s1735_s1 + $0x60] sm:$0xff]  ;;  %v175_v43 = vld [vmem:[%s1735_s1 + $0x68] sm:$0xff]  ;;  %v192_v44 = vld [vmem:[%s1735_s1 + $0xf0] sm:$0xff] }
  0x18   : > { %s1446_s30 = scalar_lea.vmem %s1734_s0, %s839_s20  ;;  %v193_v45 = vld [vmem:[%s1735_s1 + $0xf8] sm:$0xff]  ;;  %v1031_v46 = vpack.c.bf16 %v175_v43, %v174_v42  ;;  %v176_v48 = vld [vmem:[%s1735_s1 + $0x70] sm:$0xff] }
  0x19   : > { %v1449_v16 = vld [vmem:[%s1446_s30] sm:$0xff]  ;;  %v1034_v47 = vpack.c.bf16 %v193_v45, %v192_v44  ;;  %v177_v49 = vld [vmem:[%s1735_s1 + $0x78] sm:$0xff]  ;;  %v195_v51 = vld [vmem:[%s1446_s30 + $0x8] sm:$0xff] }
  0x1a   : > { %v1452_v17 = vld [vmem:[%s1446_s30 + $0x40] sm:$0xff]  ;;  %1003 = vmatpush3.bf16.xpose.msk.msra.mxu0 %vm1406_vm1, %v1001_v14  ;;  %1049 = vmatpush3.bf16.xpose.msk.msra.mxu1 %vm1406_vm1, %v1001_v14  ;;  %v1037_v50 = vpack.c.bf16 %v177_v49, %v176_v48  ;;  %v203_v52 = vld [vmem:[%s1446_s30 + $0x48] sm:$0xff]  ;;  %v196_v53 = vld [vmem:[%s1446_s30 + $0x10] sm:$0xff] }
  0x1b   : > { %1006 = vmatprep.subr.msk.bf16.mxu0 %vm1406_vm1, %v1004_v15  ;;  %1042 = vmatprep.subr.msk.bf16.mxu1 %vm1406_vm1, %v1004_v15  ;;  %v204_v54 = vld [vmem:[%s1446_s30 + $0x50] sm:$0xff]  ;;  %v197_v55 = vld [vmem:[%s1446_s30 + $0x18] sm:$0xff]  ;;  %v198_v57 = vld [vmem:[%s1446_s30 + $0x20] sm:$0xff] }
  0x1c   : > { %960 = vmatprep.mubr.msk.f32.mxu0 %vm210_vm0, %v1449_v16  ;;  %976 = vmatprep.mubr.msk.f32.mxu1 %vm210_vm0, %v1452_v17  ;;  %v205_v56 = vld [vmem:[%s1446_s30 + $0x58] sm:$0xff]  ;;  %v206_v58 = vld [vmem:[%s1446_s30 + $0x60] sm:$0xff]  ;;  %v199_v59 = vld [vmem:[%s1446_s30 + $0x28] sm:$0xff] }
  0x1d   : > { %v207_v60 = vld [vmem:[%s1446_s30 + $0x68] sm:$0xff]  ;;  %v200_v61 = vld [vmem:[%s1446_s30 + $0x30] sm:$0xff]  ;;  %v201_v63 = vld [vmem:[%s1446_s30 + $0x38] sm:$0xff] }
  0x1e   : > { %v208_v62 = vld [vmem:[%s1446_s30 + $0x70] sm:$0xff]  ;;  %v209_v0 = vld [vmem:[%s1446_s30 + $0x78] sm:$0xff]  ;;  %s149_s30 = sand.u32 1, %s1303_s10  }
  0x1f   : > { %s837_s20 = sshll.u32 %s149_s30, 8  ;;  %s1688_s12 = scalar_lea.sflag [#allocation3], %s149_s30 }
  0x20   : > { %s1629_s23 = scalar_lea.vmem [#allocation2], %s837_s20 }
  0x21   : > { %s757_s25 = sshll.u32 %s1629_s23, 4  ;;  %s1681_s25 = int_to_ptr.vmem [resolvable:$true] %s757_s25 }
  0x22   : > { %1009 = vmatpush3.bf16.xpose.msk.msra.mxu0 %vm1406_vm1, %v1007_v22  ;;  %1050 = vmatpush3.bf16.xpose.msk.msra.mxu1 %vm1406_vm1, %v1007_v22  ;;  %s1241_s29 = scalar_lea.vmem %s1681_s25, 4096  ;;  %p1248_p1 = scmp.lt.s32.totalorder %s1681_s25, %s1246_s4 }
  0x23   : > { %1012 = vmatprep.subr.msk.bf16.mxu0 %vm1406_vm1, %v1010_v23  ;;  %1043 = vmatprep.subr.msk.bf16.mxu1 %vm1406_vm1, %v1010_v23  ;;  %p1242_p12 = scmp.ne.s32.totalorder %s1681_s25, %s1241_s29  ;;  %p1249_p2 = scmp.lt.s32.totalorder %s1247_s5, %s1241_s29 }
  0x25   : > { %p1243_p13 = pnand %p1242_p12, %p1379_p4  ;;  %p1250_p3 = por %p1249_p2, %p1248_p1 }
  0x27   : > { %p1244_p0 = pneg %p1243_p13 }
  0x29   : > { %p1251_p5 = pnand %p1250_p3, %p1244_p0 }
  0x2a   : > { %1015 = vmatpush3.bf16.xpose.msk.msra.mxu0 %vm1406_vm1, %v1013_v28  ;;  %1051 = vmatpush3.bf16.xpose.msk.msra.mxu1 %vm1406_vm1, %v1013_v28 }
  0x2b   : > { %1018 = vmatprep.subr.msk.bf16.mxu0 %vm1406_vm1, %v1016_v29  ;;  %1044 = vmatprep.subr.msk.bf16.mxu1 %vm1406_vm1, %v1016_v29 }
  0x32   : > { %1021 = vmatpush3.bf16.xpose.msk.msra.mxu0 %vm1406_vm1, %v1019_v34  ;;  %1052 = vmatpush3.bf16.xpose.msk.msra.mxu1 %vm1406_vm1, %v1019_v34 }
  0x33   : > { %1024 = vmatprep.subr.msk.bf16.mxu0 %vm1406_vm1, %v1022_v35  ;;  %1045 = vmatprep.subr.msk.bf16.mxu1 %vm1406_vm1, %v1022_v35 }
  0x3a   : > { %1027 = vmatpush3.bf16.xpose.msk.msra.mxu0 %vm1406_vm1, %v1025_v40  ;;  %1053 = vmatpush3.bf16.xpose.msk.msra.mxu1 %vm1406_vm1, %v1025_v40 }
  0x3b   : > { %1030 = vmatprep.subr.msk.bf16.mxu0 %vm1406_vm1, %v1028_v41  ;;  %1046 = vmatprep.subr.msk.bf16.mxu1 %vm1406_vm1, %v1028_v41 }
  0x42   : > { %1033 = vmatpush3.bf16.xpose.msk.msra.mxu0 %vm1406_vm1, %v1031_v46  ;;  %1054 = vmatpush3.bf16.xpose.msk.msra.mxu1 %vm1406_vm1, %v1031_v46 }
  0x43   : > { %1036 = vmatprep.subr.msk.bf16.mxu0 %vm1406_vm1, %v1034_v47  ;;  %1047 = vmatprep.subr.msk.bf16.mxu1 %vm1406_vm1, %v1034_v47 }
  0x4a   : > { %1039 = vmatpush3.bf16.xpose.msk.msra.mxu0 %vm1406_vm1, %v1037_v50  ;;  %1055 = vmatpush3.bf16.xpose.msk.msra.mxu1 %vm1406_vm1, %v1037_v50 }
  0x51   : > { %961 = vmatmul.mubr.msk.f32.vlgmr.msra.gmra.mrb[0].mxu0 %vm210_vm0, %v1449_v16  ;;  %977 = vmatmul.mubr.msk.f32.vlgmr.msra.gmra.mrb[0].mxu1 %vm210_vm0, %v1452_v17 }
  0x52   : > { %962 = vmatprep.mubr.msk.f32.mxu0 %vm210_vm0, %v195_v51  ;;  %978 = vmatprep.mubr.msk.f32.mxu1 %vm210_vm0, %v203_v52 }
  0x55   : > { %963 = vmatmul.mubr.msk.f32.gmra.mrb[2].mxu0 %vm210_vm0, %v195_v51  ;;  %979 = vmatmul.mubr.msk.f32.gmra.mrb[2].mxu1 %vm210_vm0, %v203_v52 }
  0x56   : > { %964 = vmatprep.mubr.msk.f32.mxu0 %vm210_vm0, %v196_v53  ;;  %980 = vmatprep.mubr.msk.f32.mxu1 %vm210_vm0, %v204_v54 }
  0x59   : > { %965 = vmatmul.mubr.msk.f32.gmra.mrb[4].mxu0 %vm210_vm0, %v196_v53  ;;  %981 = vmatmul.mubr.msk.f32.gmra.mrb[4].mxu1 %vm210_vm0, %v204_v54 }
  0x5a   : > { %966 = vmatprep.mubr.msk.f32.mxu0 %vm210_vm0, %v197_v55  ;;  %982 = vmatprep.mubr.msk.f32.mxu1 %vm210_vm0, %v205_v56 }
  0x5d   : > { %967 = vmatmul.mubr.msk.f32.gmra.mrb[6].mxu0 %vm210_vm0, %v197_v55  ;;  %983 = vmatmul.mubr.msk.f32.gmra.mrb[6].mxu1 %vm210_vm0, %v205_v56 }
  0x5e   : > { %968 = vmatprep.mubr.msk.f32.mxu0 %vm210_vm0, %v198_v57  ;;  %984 = vmatprep.mubr.msk.f32.mxu1 %vm210_vm0, %v206_v58 }
  0x61   : > { %969 = vmatmul.mubr.msk.f32.gmra.mrb[8].mxu0 %vm210_vm0, %v198_v57  ;;  %985 = vmatmul.mubr.msk.f32.gmra.mrb[8].mxu1 %vm210_vm0, %v206_v58 }
  0x62   : > { %970 = vmatprep.mubr.msk.f32.mxu0 %vm210_vm0, %v199_v59  ;;  %986 = vmatprep.mubr.msk.f32.mxu1 %vm210_vm0, %v207_v60 }
  0x65   : > { %971 = vmatmul.mubr.msk.f32.gmra.mrb[10].mxu0 %vm210_vm0, %v199_v59  ;;  %987 = vmatmul.mubr.msk.f32.gmra.mrb[10].mxu1 %vm210_vm0, %v207_v60 }
  0x66   : > { %972 = vmatprep.mubr.msk.f32.mxu0 %vm210_vm0, %v200_v61  ;;  %988 = vmatprep.mubr.msk.f32.mxu1 %vm210_vm0, %v208_v62 }
  0x69   : > { %973 = vmatmul.mubr.msk.f32.gmra.mrb[12].mxu0 %vm210_vm0, %v200_v61  ;;  %989 = vmatmul.mubr.msk.f32.gmra.mrb[12].mxu1 %vm210_vm0, %v208_v62 }
  0x6a   : > { %974 = vmatprep.mubr.msk.f32.mxu0 %vm210_vm0, %v201_v63  ;;  %990 = vmatprep.mubr.msk.f32.mxu1 %vm210_vm0, %v209_v0 }
  0x6d   : > { %975 = vmatmul.mubr.msk.f32.gmra.mrb[14].mxu0 %vm210_vm0, %v201_v63  ;;  %991 = vmatmul.mubr.msk.f32.gmra.mrb[14].mxu1 %vm210_vm0, %v209_v0 }
 0x124   : > { %v421_v1 = vpop.f32.mrb[0].mxu0  ;;  %v469_v2 = vpop.f32.mrb[0].mxu1 }
 0x125   : > { %v888_v3 = vmul.f32 -1.442695, %v421_v1  ;;  %v904_v4 = vmul.f32 -1.442695, %v469_v2  ;;  %v423_v5 = vpop.f32.mrb[1].mxu0  ;;  %v471_v6 = vpop.f32.mrb[1].mxu1 }
 0x126   : > { %v889_v7 = vmul.f32 -1.442695, %v423_v5  ;;  %v905_v8 = vmul.f32 -1.442695, %v471_v6 }
 0x127   : > { %1113 = vpow2.f32 %v888_v3 }
 0x128   : > { %1115 = vpow2.f32 %v904_v4  ;;  %v427_v9 = vpop.f32.mrb[2].mxu0  ;;  %v475_v10 = vpop.f32.mrb[2].mxu1 }
 0x129   : > { %1117 = vpow2.f32 %v889_v7  ;;  %v890_v11 = vmul.f32 -1.442695, %v427_v9  ;;  %v906_v12 = vmul.f32 -1.442695, %v475_v10  ;;  %v429_v13 = vpop.f32.mrb[3].mxu0  ;;  %v477_v14 = vpop.f32.mrb[3].mxu1 }
 0x12a   : > { %1119 = vpow2.f32 %v905_v8  ;;  %v891_v15 = vmul.f32 -1.442695, %v429_v13  ;;  %v907_v16 = vmul.f32 -1.442695, %v477_v14 }
 0x12b   : > { %1121 = vpow2.f32 %v890_v11 }
 0x12c   : > { %1123 = vpow2.f32 %v906_v12  ;;  %v433_v17 = vpop.f32.mrb[4].mxu0  ;;  %v481_v18 = vpop.f32.mrb[4].mxu1 }
 0x12d   : > { %1125 = vpow2.f32 %v891_v15  ;;  %v892_v19 = vmul.f32 -1.442695, %v433_v17  ;;  %v908_v20 = vmul.f32 -1.442695, %v481_v18  ;;  %v435_v21 = vpop.f32.mrb[5].mxu0  ;;  %v483_v22 = vpop.f32.mrb[5].mxu1 }
 0x12e   : > { %1127 = vpow2.f32 %v907_v16  ;;  %v893_v23 = vmul.f32 -1.442695, %v435_v21  ;;  %v909_v24 = vmul.f32 -1.442695, %v483_v22 }
 0x12f   : > { %1129 = vpow2.f32 %v892_v19 }
 0x130   : > { %1131 = vpow2.f32 %v908_v20  ;;  %v439_v25 = vpop.f32.mrb[6].mxu0  ;;  %v487_v26 = vpop.f32.mrb[6].mxu1 }
 0x131   : > { %v1114_v27 = vpop.eup %1113  ;;  %1133 = vpow2.f32 %v893_v23  ;;  %v894_v28 = vmul.f32 -1.442695, %v439_v25  ;;  %v441_v29 = vpop.f32.mrb[7].mxu0  ;;  %v910_v1 = vmul.f32 -1.442695, %v487_v26 }
 0x132   : > { %v489_v30 = vpop.f32.mrb[7].mxu1  ;;  %v1116_v31 = vpop.eup %1115  ;;  %v612_v32 = vadd.f32 1.0, %v1114_v27  ;;  %1135 = vpow2.f32 %v909_v24  ;;  %v895_v5 = vmul.f32 -1.442695, %v441_v29 }
 0x133   : > { %v1118_v33 = vpop.eup %1117  ;;  %v628_v34 = vadd.f32 1.0, %v1116_v31  ;;  %1137 = vpow2.f32 %v894_v28  ;;  %v911_v8 = vmul.f32 -1.442695, %v489_v30 }
 0x134   : > { %v1120_v35 = vpop.eup %1119  ;;  %1139 = vrcp.f32 %v612_v32  ;;  %v613_v36 = vadd.f32 1.0, %v1118_v33  ;;  %v445_v37 = vpop.f32.mrb[8].mxu0 }
 0x135   : > { %v493_v38 = vpop.f32.mrb[8].mxu1  ;;  %v1122_v39 = vpop.eup %1121  ;;  %1141 = vrcp.f32 %v628_v34  ;;  %v629_v40 = vadd.f32 1.0, %v1120_v35  ;;  %v896_v10 = vmul.f32 -1.442695, %v445_v37 }
 0x136   : > { %v447_v41 = vpop.f32.mrb[9].mxu0  ;;  %v1124_v42 = vpop.eup %1123  ;;  %1143 = vrcp.f32 %v613_v36  ;;  %v614_v43 = vadd.f32 1.0, %v1122_v39  ;;  %v912_v14 = vmul.f32 -1.442695, %v493_v38 }
 0x137   : > { %v495_v44 = vpop.f32.mrb[9].mxu1  ;;  %v1126_v45 = vpop.eup %1125  ;;  %1145 = vrcp.f32 %v629_v40  ;;  %v630_v46 = vadd.f32 1.0, %v1124_v42  ;;  %v897_v18 = vmul.f32 -1.442695, %v447_v41 }
 0x138   : > { %v1128_v47 = vpop.eup %1127  ;;  %1147 = vrcp.f32 %v614_v43  ;;  %v615_v48 = vadd.f32 1.0, %v1126_v45  ;;  %v451_v49 = vpop.f32.mrb[10].mxu0  ;;  %v913_v20 = vmul.f32 -1.442695, %v495_v44 }
 0x139   : > { %v499_v50 = vpop.f32.mrb[10].mxu1  ;;  %v1130_v51 = vpop.eup %1129  ;;  %1149 = vrcp.f32 %v630_v46  ;;  %v631_v52 = vadd.f32 1.0, %v1128_v47  ;;  %v898_v22 = vmul.f32 -1.442695, %v451_v49 }
 0x13a   : > { %v453_v53 = vpop.f32.mrb[11].mxu0  ;;  %v1132_v54 = vpop.eup %1131  ;;  %1151 = vrcp.f32 %v615_v48  ;;  %v616_v55 = vadd.f32 1.0, %v1130_v51  ;;  %v914_v24 = vmul.f32 -1.442695, %v499_v50 }
 0x13b   : > { %v501_v56 = vpop.f32.mrb[11].mxu1  ;;  %v1134_v57 = vpop.eup %1133  ;;  %1153 = vrcp.f32 %v631_v52  ;;  %v632_v58 = vadd.f32 1.0, %v1132_v54  ;;  %v899_v26 = vmul.f32 -1.442695, %v453_v53 }
 0x13c   : > { %v1136_v59 = vpop.eup %1135  ;;  %1155 = vrcp.f32 %v616_v55  ;;  %v617_v60 = vadd.f32 1.0, %v1134_v57  ;;  %v457_v61 = vpop.f32.mrb[12].mxu0  ;;  %v915_v28 = vmul.f32 -1.442695, %v501_v56 }
 0x13d   : > { %v505_v62 = vpop.f32.mrb[12].mxu1  ;;  %v1138_v63 = vpop.eup %1137  ;;  %1157 = vrcp.f32 %v632_v58  ;;  %v633_v0 = vadd.f32 1.0, %v1136_v59  ;;  %v900_v30 = vmul.f32 -1.442695, %v457_v61 }
 0x13e   : > { %v1625_v2 = vpop.f32.mrb[13].mxu0  ;;  %v1140_v3 = vpop.eup %1139  ;;  %1159 = vrcp.f32 %v617_v60  ;;  %v618_v4 = vadd.f32 1.0, %v1138_v63  ;;  %v916_v32 = vmul.f32 -1.442695, %v505_v62 }
 0x13f   : > { %v1627_v6 = vpop.f32.mrb[13].mxu1  ;;  %v1142_v7 = vpop.eup %1141  ;;  %708 = vst [vmem:[%s1629_s23] sm:$0xff] %v1140_v3  ;;  %1161 = vrcp.f32 %v633_v0  ;;  %v901_v59 = vmul.f32 -1.442695, %v1625_v2 }
 0x140   : > { %v1144_v9 = vpop.eup %1143  ;;  %724 = vst [vmem:[%s1629_s23 + $0x80] sm:$0xff] %v1142_v7  ;;  %1163 = vrcp.f32 %v618_v4  ;;  %v1633_v11 = vpop.f32.mrb[14].mxu0  ;;  %v917_v62 = vmul.f32 -1.442695, %v1627_v6 }
 0x141   : > { %v1635_v12 = vpop.f32.mrb[14].mxu1  ;;  %v1146_v13 = vpop.eup %1145  ;;  %709 = vst [vmem:[%s1629_s23 + $0x8] sm:$0xff] %v1144_v9  ;;  %1165 = vpow2.f32 %v910_v1  ;;  %v902_v0 = vmul.f32 -1.442695, %v1633_v11 }
 0x142   : > { %v1638_v15 = vpop.f32.mrb[15].mxu0  ;;  %v1640_v16 = vpop.f32.mrb[15].mxu1  ;;  %725 = vst [vmem:[%s1629_s23 + $0x88] sm:$0xff] %v1146_v13  ;;  %1167 = vpow2.f32 %v895_v5  ;;  %v918_v3 = vmul.f32 -1.442695, %v1635_v12 }
 0x143   : > { %v1148_v17 = vpop.eup %1147  ;;  %1169 = vpow2.f32 %v911_v8  ;;  %v903_v4 = vmul.f32 -1.442695, %v1638_v15  ;;  %v919_v6 = vmul.f32 -1.442695, %v1640_v16 }
 0x144   : > { %v1150_v19 = vpop.eup %1149  ;;  %710 = vst [vmem:[%s1629_s23 + $0x10] sm:$0xff] %v1148_v17  ;;  %1171 = vpow2.f32 %v896_v10 }
 0x145   : > { %v1152_v21 = vpop.eup %1151  ;;  %726 = vst [vmem:[%s1629_s23 + $0x90] sm:$0xff] %v1150_v19  ;;  %1173 = vpow2.f32 %v912_v14 }
 0x146   : > { %v1154_v23 = vpop.eup %1153  ;;  %711 = vst [vmem:[%s1629_s23 + $0x18] sm:$0xff] %v1152_v21  ;;  %1175 = vpow2.f32 %v897_v18 }
 0x147   : > { %v1156_v25 = vpop.eup %1155  ;;  %727 = vst [vmem:[%s1629_s23 + $0x98] sm:$0xff] %v1154_v23  ;;  %1177 = vpow2.f32 %v913_v20 }
 0x148   : > { %v1158_v27 = vpop.eup %1157  ;;  %712 = vst [vmem:[%s1629_s23 + $0x20] sm:$0xff] %v1156_v25  ;;  %1179 = vpow2.f32 %v898_v22 }
 0x149   : > { %v1160_v29 = vpop.eup %1159  ;;  %728 = vst [vmem:[%s1629_s23 + $0xa0] sm:$0xff] %v1158_v27  ;;  %1181 = vpow2.f32 %v914_v24 }
 0x14a   : > { %v1162_v31 = vpop.eup %1161  ;;  %713 = vst [vmem:[%s1629_s23 + $0x28] sm:$0xff] %v1160_v29  ;;  %1183 = vpow2.f32 %v899_v26 }
 0x14b   : > { %v1164_v33 = vpop.eup %1163  ;;  %729 = vst [vmem:[%s1629_s23 + $0xa8] sm:$0xff] %v1162_v31  ;;  %1185 = vpow2.f32 %v915_v28 }
 0x14c   : > { %v1166_v34 = vpop.eup %1165  ;;  %714 = vst [vmem:[%s1629_s23 + $0x30] sm:$0xff] %v1164_v33  ;;  %1187 = vpow2.f32 %v900_v30 }
 0x14d   : > { %v1168_v35 = vpop.eup %1167  ;;  %v634_v36 = vadd.f32 1.0, %v1166_v34  ;;  %1189 = vpow2.f32 %v916_v32 }
 0x14e   : > { %v1170_v37 = vpop.eup %1169  ;;  %v619_v38 = vadd.f32 1.0, %v1168_v35 }
 0x14f   : > { %v1172_v39 = vpop.eup %1171  ;;  %1191 = vrcp.f32 %v634_v36  ;;  %v635_v40 = vadd.f32 1.0, %v1170_v37 }
 0x150   : > { %v1174_v41 = vpop.eup %1173  ;;  %1193 = vrcp.f32 %v619_v38  ;;  %v620_v42 = vadd.f32 1.0, %v1172_v39 }
 0x151   : > { %v1176_v43 = vpop.eup %1175  ;;  %1195 = vrcp.f32 %v635_v40  ;;  %v636_v44 = vadd.f32 1.0, %v1174_v41 }
 0x152   : > { %v1178_v45 = vpop.eup %1177  ;;  %1197 = vrcp.f32 %v620_v42  ;;  %v621_v46 = vadd.f32 1.0, %v1176_v43 }
 0x153   : > { %v1180_v47 = vpop.eup %1179  ;;  %1199 = vrcp.f32 %v636_v44  ;;  %v637_v48 = vadd.f32 1.0, %v1178_v45 }
 0x154   : > { %v1182_v49 = vpop.eup %1181  ;;  %1201 = vrcp.f32 %v621_v46  ;;  %v622_v50 = vadd.f32 1.0, %v1180_v47 }
 0x155   : > { %v1184_v51 = vpop.eup %1183  ;;  %1203 = vrcp.f32 %v637_v48  ;;  %v638_v52 = vadd.f32 1.0, %v1182_v49 }
 0x156   : > { %v1186_v53 = vpop.eup %1185  ;;  %1205 = vrcp.f32 %v622_v50  ;;  %v623_v54 = vadd.f32 1.0, %v1184_v51 }
 0x157   : > { %v1188_v55 = vpop.eup %1187  ;;  %1207 = vrcp.f32 %v638_v52  ;;  %v639_v56 = vadd.f32 1.0, %v1186_v53 }
 0x158   : > { %v1190_v57 = vpop.eup %1189  ;;  %1209 = vrcp.f32 %v623_v54  ;;  %v624_v58 = vadd.f32 1.0, %v1188_v55 }
 0x159   : > { %v1192_v60 = vpop.eup %1191  ;;  %1211 = vrcp.f32 %v639_v56  ;;  %v640_v61 = vadd.f32 1.0, %v1190_v57 }
 0x15a   : > { %v1194_v63 = vpop.eup %1193  ;;  %730 = vst [vmem:[%s1629_s23 + $0xb0] sm:$0xff] %v1192_v60  ;;  %1213 = vrcp.f32 %v624_v58 }
 0x15b   : > { %v1196_v1 = vpop.eup %1195  ;;  %715 = vst [vmem:[%s1629_s23 + $0x38] sm:$0xff] %v1194_v63  ;;  %1215 = vrcp.f32 %v640_v61 }
 0x15c   : > { %v1198_v2 = vpop.eup %1197  ;;  %731 = vst [vmem:[%s1629_s23 + $0xb8] sm:$0xff] %v1196_v1  ;;  %1217 = vpow2.f32 %v901_v59 }
 0x15d   : > { %v1200_v5 = vpop.eup %1199  ;;  %716 = vst [vmem:[%s1629_s23 + $0x40] sm:$0xff] %v1198_v2  ;;  %1219 = vpow2.f32 %v917_v62 }
 0x15e   : > { %v1202_v7 = vpop.eup %1201  ;;  %732 = vst [vmem:[%s1629_s23 + $0xc0] sm:$0xff] %v1200_v5  ;;  %1221 = vpow2.f32 %v902_v0 }
 0x15f   : > { %v1204_v8 = vpop.eup %1203  ;;  %717 = vst [vmem:[%s1629_s23 + $0x48] sm:$0xff] %v1202_v7  ;;  %1223 = vpow2.f32 %v918_v3 }
 0x160   : > { %v1206_v9 = vpop.eup %1205  ;;  %733 = vst [vmem:[%s1629_s23 + $0xc8] sm:$0xff] %v1204_v8  ;;  %1225 = vpow2.f32 %v903_v4 }
 0x161   : > { %v1208_v10 = vpop.eup %1207  ;;  %718 = vst [vmem:[%s1629_s23 + $0x50] sm:$0xff] %v1206_v9  ;;  %1227 = vpow2.f32 %v919_v6 }
 0x162   : > { %v1210_v11 = vpop.eup %1209  ;;  %734 = vst [vmem:[%s1629_s23 + $0xd0] sm:$0xff] %v1208_v10 }
 0x163   : > { %v1212_v12 = vpop.eup %1211  ;;  %719 = vst [vmem:[%s1629_s23 + $0x58] sm:$0xff] %v1210_v11 }
 0x164   : > { %v1214_v13 = vpop.eup %1213  ;;  %735 = vst [vmem:[%s1629_s23 + $0xd8] sm:$0xff] %v1212_v12 }
 0x165   : > { %v1216_v14 = vpop.eup %1215  ;;  %720 = vst [vmem:[%s1629_s23 + $0x60] sm:$0xff] %v1214_v13 }
 0x166   : > { %v1218_v15 = vpop.eup %1217  ;;  %736 = vst [vmem:[%s1629_s23 + $0xe0] sm:$0xff] %v1216_v14 }
 0x167   : > { %v1220_v16 = vpop.eup %1219  ;;  %v625_v17 = vadd.f32 1.0, %v1218_v15 }
 0x168   : > { %v1222_v18 = vpop.eup %1221  ;;  %v641_v19 = vadd.f32 1.0, %v1220_v16 }
 0x169   : > { %v1224_v20 = vpop.eup %1223  ;;  %1229 = vrcp.f32 %v625_v17  ;;  %v626_v21 = vadd.f32 1.0, %v1222_v18 }
 0x16a   : > { %v1226_v22 = vpop.eup %1225  ;;  %1231 = vrcp.f32 %v641_v19  ;;  %v642_v23 = vadd.f32 1.0, %v1224_v20 }
 0x16b   : > { %v1228_v24 = vpop.eup %1227  ;;  %1233 = vrcp.f32 %v626_v21  ;;  %v627_v25 = vadd.f32 1.0, %v1226_v22 }
 0x16c   : > { %1235 = vrcp.f32 %v642_v23  ;;  %v643_v26 = vadd.f32 1.0, %v1228_v24 }
 0x16d   : > { %1237 = vrcp.f32 %v627_v25 }
 0x16e   : > { %1239 = vrcp.f32 %v643_v26 }
 0x173   : > { %v1230_v27 = vpop.eup %1229 }
 0x174   : > { %v1232_v28 = vpop.eup %1231  ;;  %721 = vst [vmem:[%s1629_s23 + $0x68] sm:$0xff] %v1230_v27 }
 0x175   : > { %v1234_v29 = vpop.eup %1233  ;;  %737 = vst [vmem:[%s1629_s23 + $0xe8] sm:$0xff] %v1232_v28 }
 0x176   : > { %v1236_v30 = vpop.eup %1235  ;;  %722 = vst [vmem:[%s1629_s23 + $0x70] sm:$0xff] %v1234_v29 }
 0x177   : > { %v1238_v31 = vpop.eup %1237  ;;  %738 = vst [vmem:[%s1629_s23 + $0xf0] sm:$0xff] %v1236_v30 }
 0x178   : > { %v1240_v32 = vpop.eup %1239  ;;  %723 = vst [vmem:[%s1629_s23 + $0x78] sm:$0xff] %v1238_v31 }
 0x179   : > { %739 = vst [vmem:[%s1629_s23 + $0xf8] sm:$0xff] %v1240_v32 }
 0x17a   : > { %1254 = shalt.err (!%p1251_p5)
}
 0x17b   : > { %s1255_s6 = scalar_lea.hbm %s1679_s28, 4096  ;;  %s1259_s15 = scalar_lea.hbm %s1736_s2, 8192 }
 0x17c   : > { %p1256_p6 = scmp.ne.s32.totalorder %s1679_s28, %s1255_s6  ;;  %p1260_p10 = scmp.lt.u32.totalorder %s1679_s28, %s1736_s2 }
 0x17d   : > { %p1261_p11 = scmp.lt.u32.totalorder %s1259_s15, %s1255_s6  ;;  %p1263_p13 = scmp.lt.u32.totalorder %s1255_s6, %s1679_s28 }
 0x17e   : > { %p1257_p7 = pnand %p1256_p6, %p1379_p4 }
 0x17f   : > { %p1262_p12 = por %p1261_p11, %p1260_p10 }
 0x180   : > { %p1258_p9 = pneg %p1257_p7 }
 0x181   : > { %p1264_p0 = por %p1263_p13, %p1262_p12 }
 0x183   : > { %p1265_p1 = pnand %p1264_p0, %p1258_p9 }
 0x185   : > { %1268 = shalt.err (!%p1265_p1)
}
 0x186   : > { %s1322_s30 = smov 256   ;;  %s1323_s20 = smov 16  }
 0x187   : > { %1056 = dma.vmem_to_hbm [thread:$0]  (%p1379_p4), %s1681_s25, 4096, %s1679_s28, %s1688_s12, %s1322_s30, %s1322_s30, %s1323_s20  }
 0x188 PF: > { %p1062_p2 = scmp.ge.s32.totalorder %s1319_s14, 2  ;;  %s772_s23 = sand.u32 1, %s1299_s9  }
 0x189   : > { %s773_s24 = scalar_lea.sflag [#allocation3], %s772_s23 }
 0x18a   : > { %p1059_p3 = pnand %p1062_p2, %p1386_p8 }
 0x18c   : > { %1294 = dma.done.wait (!%p1059_p3), %s773_s24, 4096  }
 0x18d   : > { %1296 = vsyncadd (!%p1059_p3), %s773_s24, 4294963200  ;;  %s15_s14 = sadd.s32 1, %s1319_s14   ;;  %s1741_s9 = smov %s1303_s10 }
 0x18e   : > { %p12_p5 = scmp.ge.s32.totalorder %s15_s14, 4   ;;  %s1742_s10 = smov %s1307_s11 }
 0x18f   : > { %s1743_s11 = smov %s1392_s22  ;;  %s1744_s12 = smov %s1315_s13 }
 0x190   : > { %s1745_s13 = smov %s1747_s17  ;;  %14 = sbr.rel (!%p12_p5) target bundleno = 4 (0x4), region = 64 }
 0x197   :  { %778 = vsyncpa [#allocation3], 1 }
 0x198   :  { %780 = vsyncpa [#allocation3 + $0x1], 1 }

</bundles_post_ra>
